<compile_context>
chip_gen: v7x
topology: tpu7x:2x2x1
jax: 0.10.0
libtpu: 0.0.40
codegen_flags: <defaults>
</compile_context>

<pallas_src>
import jax
import jax.numpy as jnp
from jax.experimental import pallas as pl
from jax.experimental.pallas import tpu as pltpu

LANE = 128
EPS = 1e-5                      # PyTorch BatchNorm3d default eps
COMPUTE_DTYPE = jnp.bfloat16    # matmul operand dtype (f32 accumulation)
VMEM_LIMIT = 32 * 1024 * 1024   # safe on v5e/v6e (128 MiB) and v7x (64 MiB)


def _round_up(x, m):
    return ((x + m - 1) // m) * m


# ----------------------------- Pallas kernels ------------------------------ #

def _fused_proj_kernel(x_ref, w_ref, b_ref, o_ref):
    # rows @ W_cat + b_cat : one matmul produces [g | theta/N | phi]
    acc = jnp.dot(x_ref[...], w_ref[...], preferred_element_type=jnp.float32)
    o_ref[...] = (acc + b_ref[...]).astype(o_ref.dtype)


def _attn_epilogue_kernel(theta_ref, phi_ref, g_ref, x_ref, wf_ref, bf_ref,
                          o_ref, acc_ref):
    # Per (batch, q-tile): accumulate (theta @ phi^T) @ g over key tiles; on the
    # last key tile apply the BN-folded W conv and the residual add.
    ik = pl.program_id(2)

    @pl.when(ik == 0)
    def _():
        acc_ref[...] = jnp.zeros_like(acc_ref)

    # f = theta @ phi^T  (contract channel dim; 1/N already folded into theta)
    f = jax.lax.dot_general(
        theta_ref[...], phi_ref[...],
        dimension_numbers=(((1,), (1,)), ((), ())),
        preferred_element_type=jnp.float32)
    acc_ref[...] += jnp.dot(f.astype(g_ref.dtype), g_ref[...],
                            preferred_element_type=jnp.float32)

    @pl.when(ik == pl.num_programs(2) - 1)
    def _():
        y = acc_ref[...].astype(wf_ref.dtype)
        z = (jnp.dot(y, wf_ref[...], preferred_element_type=jnp.float32)
             + bf_ref[...] + x_ref[...])
        o_ref[...] = z.astype(o_ref.dtype)


# --------------------------- pallas_call wrappers --------------------------- #

def fused_projection(x_blc, w_cat, b_cat, *, tm):
    """x_blc: (B, Np, Cp) bf16; w_cat: (Cp, 3*Cip) bf16; b_cat: (1, 3*Cip) f32."""
    B, Np, Cp = x_blc.shape
    Co = w_cat.shape[1]
    return pl.pallas_call(
        _fused_proj_kernel,
        out_shape=jax.ShapeDtypeStruct((B, Np, Co), COMPUTE_DTYPE),
        grid=(B, Np // tm),
        in_specs=[
            pl.BlockSpec((None, tm, Cp), lambda b, i: (b, i, 0)),
            pl.BlockSpec((Cp, Co), lambda b, i: (0, 0)),
            pl.BlockSpec((1, Co), lambda b, i: (0, 0)),
        ],
        out_specs=pl.BlockSpec((None, tm, Co), lambda b, i: (b, i, 0)),
        compiler_params=pltpu.CompilerParams(
            dimension_semantics=("parallel", "parallel"),
            vmem_limit_bytes=VMEM_LIMIT),
    )(x_blc, w_cat, b_cat)


def attention_w_residual(theta, phi, g, x, wf, bf, *, tq, tk, out_dtype):
    """theta: (B, Nqp, Cip) bf16; phi, g: (B, Nkp, Cip) bf16;
       x: (B, Nqp, Cp) f32 (residual); wf: (Cip, Cp) bf16; bf: (1, Cp) f32."""
    B, Nqp, Cip = theta.shape
    Nkp = phi.shape[1]
    Cp = x.shape[2]
    return pl.pallas_call(
        _attn_epilogue_kernel,
        out_shape=jax.ShapeDtypeStruct((B, Nqp, Cp), out_dtype),
        grid=(B, Nqp // tq, Nkp // tk),
        in_specs=[
            pl.BlockSpec((None, tq, Cip), lambda b, iq, ik: (b, iq, 0)),
            pl.BlockSpec((None, tk, Cip), lambda b, iq, ik: (b, ik, 0)),
            pl.BlockSpec((None, tk, Cip), lambda b, iq, ik: (b, ik, 0)),
            pl.BlockSpec((None, tq, Cp), lambda b, iq, ik: (b, iq, 0)),
            pl.BlockSpec((Cip, Cp), lambda b, iq, ik: (0, 0)),
            pl.BlockSpec((1, Cp), lambda b, iq, ik: (0, 0)),
        ],
        out_specs=pl.BlockSpec((None, tq, Cp), lambda b, iq, ik: (b, iq, 0)),
        scratch_shapes=[pltpu.VMEM((tq, Cip), jnp.float32)],
        compiler_params=pltpu.CompilerParams(
            dimension_semantics=("parallel", "parallel", "arbitrary"),
            vmem_limit_bytes=VMEM_LIMIT),
    )(theta, phi, g, x, wf, bf)


# ------------------------------ JAX glue ------------------------------------ #

def init_params(key, in_channels, inter_channels):
    C, Ci = in_channels, inter_channels
    keys = jax.random.split(key, 16)
    ki = iter(range(16))

    def conv(kw, kb, cin, cout):   # PyTorch Conv3d(1x1x1) default init
        bound = 1.0 / (cin ** 0.5)
        w = jax.random.uniform(kw, (cin, cout), jnp.float32, -bound, bound)
        b = jax.random.uniform(kb, (cout,), jnp.float32, -bound, bound)
        return w, b

    p = {}
    for name in ("g1", "theta1", "phi1", "g2", "theta2", "phi2"):
        p[name + "_w"], p[name + "_b"] = conv(keys[next(ki)], keys[next(ki)], C, Ci)
    for name in ("W11", "W21"):
        p[name + "_w"], p[name + "_b"] = conv(keys[next(ki)], keys[next(ki)], Ci, C)
        # BatchNorm3d with nn.init.constant_(weight, 0) / constant_(bias, 0); eval stats.
        p[name + "_gamma"] = jnp.zeros((C,), jnp.float32)
        p[name + "_beta"] = jnp.zeros((C,), jnp.float32)
        p[name + "_mean"] = jnp.zeros((C,), jnp.float32)
        p[name + "_var"] = jnp.ones((C,), jnp.float32)
    # TODO(synk): W12/W22 exist in the module but are unused in forward -> skipped.
    return p


def nonlocal_block_forward(x1, x2, p, inter_channels):
    B, C, T, H, W = x1.shape
    assert H % 2 == 0 and W % 2 == 0, "MaxPool3d((1,2,2)) needs even H and W"
    Ci = inter_channels
    N = T * H * W
    Ns = T * (H // 2) * (W // 2)

    Cp = _round_up(C, LANE)          # lane-dense channel padding
    Cip = _round_up(Ci, LANE)

    tm = min(512, _round_up(N, 8))   # projection row tile
    tq = min(256, _round_up(N, 8))   # attention query tile
    tk = min(512, _round_up(Ns, 8))  # attention key tile
    Nmp = _round_up(N, tm)
    Nqp = _round_up(N, tq)
    Nkp = _round_up(Ns, tk)

    def to_blc(x):   # NCDHW -> channels-last rows (B, N, Cp); row order (t,h,w)
        xr = jnp.transpose(x, (0, 2, 3, 4, 1)).reshape(B, N, C)
        return jnp.pad(xr, ((0, 0), (0, 0), (0, Cp - C)))

    def pad_w(w, rin, rout):
        return jnp.pad(w, ((0, rin - w.shape[0]), (0, rout - w.shape[1])))

    def pad_b(b, rout):
        return jnp.pad(b, (0, rout - b.shape[0]))

    x1_blc = to_blc(x1)
    x2_blc = to_blc(x2)

    inv_ns = 1.0 / float(Ns)   # f / f.size(-1): folded into theta weights/bias

    def make_cat(idx):         # [g | theta/N | phi] fused projection weights
        wg = pad_w(p[f"g{idx}_w"], Cp, Cip)
        wt = pad_w(p[f"theta{idx}_w"] * inv_ns, Cp, Cip)
        wp = pad_w(p[f"phi{idx}_w"], Cp, Cip)
        bg = pad_b(p[f"g{idx}_b"], Cip)
        bt = pad_b(p[f"theta{idx}_b"] * inv_ns, Cip)
        bp = pad_b(p[f"phi{idx}_b"], Cip)
        w_cat = jnp.concatenate([wg, wt, wp], axis=1).astype(COMPUTE_DTYPE)
        b_cat = jnp.concatenate([bg, bt, bp]).reshape(1, 3 * Cip)
        return w_cat, b_cat

    def fold_bn(name):         # fold eval-mode BatchNorm3d into the W conv
        scale = p[name + "_gamma"] * jax.lax.rsqrt(p[name + "_var"] + EPS)
        wf = p[name + "_w"] * scale[None, :]
        bf = (p[name + "_b"] - p[name + "_mean"]) * scale + p[name + "_beta"]
        return (pad_w(wf, Cip, Cp).astype(COMPUTE_DTYPE),
                pad_b(bf, Cp).reshape(1, Cp))

    w_cat1, b_cat1 = make_cat(1)
    w_cat2, b_cat2 = make_cat(2)
    wf11, bf11 = fold_bn("W11")
    wf21, bf21 = fold_bn("W21")

    def project(x_blc, w_cat, b_cat):
        xq = jnp.pad(x_blc, ((0, 0), (0, Nmp - N), (0, 0))).astype(COMPUTE_DTYPE)
        out = fused_projection(xq, w_cat, b_cat, tm=tm)[:, :N, :]
        return out[:, :, :Cip], out[:, :, Cip:2 * Cip], out[:, :, 2 * Cip:]

    g1_r, th1_r, ph1_r = project(x1_blc, w_cat1, b_cat1)
    g2_r, th2_r, ph2_r = project(x2_blc, w_cat2, b_cat2)

    def pool_and_pad(v):       # MaxPool3d((1,2,2)) then zero-pad keys (exact: 0-keys add 0)
        v = v.reshape(B, T, H // 2, 2, W // 2, 2, Cip)
        v = jnp.max(v, axis=(3, 5)).reshape(B, Ns, Cip)
        return jnp.pad(v, ((0, 0), (0, Nkp - Ns), (0, 0)))

    def pad_q(v):
        return jnp.pad(v, ((0, 0), (0, Nqp - N), (0, 0)))

    g1_k, ph1_k = pool_and_pad(g1_r), pool_and_pad(ph1_r)
    g2_k, ph2_k = pool_and_pad(g2_r), pool_and_pad(ph2_r)
    th1_q, th2_q = pad_q(th1_r), pad_q(th2_r)
    x1_q, x2_q = pad_q(x1_blc), pad_q(x2_blc)

    # z11 = W11(BN((theta1/N @ phi2^T) @ g2)) + x1   (fused, BN folded)
    z11_p = attention_w_residual(th1_q, ph2_k, g2_k, x1_q, wf11, bf11,
                                 tq=tq, tk=tk, out_dtype=x1.dtype)
    # z21 = W21(BN((theta2/N @ phi1^T) @ g1)) + x2
    z21_p = attention_w_residual(th2_q, ph1_k, g1_k, x2_q, wf21, bf21,
                                 tq=tq, tk=tk, out_dtype=x2.dtype)

    def to_ncdhw(z_p):
        z = z_p[:, :N, :C].reshape(B, T, H, W, C)
        return jnp.transpose(z, (0, 4, 1, 2, 3))

    return to_ncdhw(z11_p), to_ncdhw(z21_p)


# ---------------------- pure-JAX reference (for checks) --------------------- #

def reference_forward(x1, x2, p, Ci):
    B, C, T, H, W = x1.shape
    N = T * H * W
    Ns = T * (H // 2) * (W // 2)

    def rows(x):
        return jnp.transpose(x, (0, 2, 3, 4, 1)).reshape(B, N, C)

    def proj(xr, w, b):
        return jnp.einsum("bnc,cd->bnd", xr, w) + b

    def pool(v):
        v = v.reshape(B, T, H // 2, 2, W // 2, 2, Ci)
        return jnp.max(v, axis=(3, 5)).reshape(B, Ns, Ci)

    def bn(v, name):
        scale = p[name + "_gamma"] / jnp.sqrt(p[name + "_var"] + EPS)
        return (v - p[name + "_mean"]) * scale + p[name + "_beta"]

    x1r, x2r = rows(x1), rows(x2)
    g1 = pool(proj(x1r, p["g1_w"], p["g1_b"]))
    th1 = proj(x1r, p["theta1_w"], p["theta1_b"])
    ph1 = pool(proj(x1r, p["phi1_w"], p["phi1_b"]))
    g2 = pool(proj(x2r, p["g2_w"], p["g2_b"]))
    th2 = proj(x2r, p["theta2_w"], p["theta2_b"])
    ph2 = pool(proj(x2r, p["phi2_w"], p["phi2_b"]))

    def branch(th, ph, g, xr, name):
        f = jnp.einsum("bqc,bkc->bqk", th, ph) / Ns
        y = jnp.einsum("bqk,bkc->bqc", f, g)
        wy = bn(jnp.einsum("bqc,cd->bqd", y, p[name + "_w"]) + p[name + "_b"], name)
        z = wy + xr
        return jnp.transpose(z.reshape(B, T, H, W, C), (0, 4, 1, 2, 3))

    return branch(th1, ph2, g2, x1r, "W11"), branch(th2, ph1, g1, x2r, "W21")


# --------------------------------- main -------------------------------------- #

if __name__ == "__main__":
    in_channels = 4
    inter_channels = in_channels // 2          # module default
    B, T, H, W = 2, 2, 8, 8

    key = jax.random.PRNGKey(0)
    k1, k2, kp = jax.random.split(key, 3)
    x1 = jax.random.normal(k1, (B, in_channels, T, H, W), jnp.float32)
    x2 = jax.random.normal(k2, (B, in_channels, T, H, W), jnp.float32)
    params = init_params(kp, in_channels, inter_channels)

    fwd = jax.jit(lambda a, b, p: nonlocal_block_forward(a, b, p, inter_channels))
    z11, z21 = fwd(x1, x2, params)
    jax.block_until_ready((z11, z21))

    # check 1: module semantics — BN gamma=beta=0 => W_y == 0 => z == x exactly
    assert z11.shape == x1.shape and z21.shape == x2.shape
    assert jnp.allclose(z11, x1, atol=1e-6)
    assert jnp.allclose(z21, x2, atol=1e-6)

    # check 2: full fused math vs pure-JAX reference with non-trivial BN stats
    p2 = dict(params)
    kk = jax.random.PRNGKey(7)
    for name in ("W11", "W21"):
        kg, kb, km, kv, kk = jax.random.split(kk, 5)
        p2[name + "_gamma"] = jax.random.uniform(kg, (in_channels,), jnp.float32, 0.5, 1.5)
        p2[name + "_beta"] = 0.1 * jax.random.normal(kb, (in_channels,), jnp.float32)
        p2[name + "_mean"] = 0.1 * jax.random.normal(km, (in_channels,), jnp.float32)
        p2[name + "_var"] = jax.random.uniform(kv, (in_channels,), jnp.float32, 0.5, 1.5)
    z11b, z21b = fwd(x1, x2, p2)
    r11, r21 = reference_forward(x1, x2, p2, inter_channels)
    assert jnp.allclose(z11b, r11, atol=5e-2, rtol=5e-2)   # bf16 operands vs f32 ref
    assert jnp.allclose(z21b, r21, atol=5e-2, rtol=5e-2)

    print("KERNEL_OK")
</pallas_src>

<mosaic_0001>
module attributes {stable_mosaic.version = 11 : i64} {
  func.func @_fused_proj_kernel(%arg0: i32, %arg1: i32, %arg2: memref<1x128x128xbf16, #tpu.memory_space<vmem>>, %arg3: memref<128x384xbf16, #tpu.memory_space<vmem>>, %arg4: memref<1x384xf32, #tpu.memory_space<vmem>>, %arg5: memref<1x128x384xbf16, #tpu.memory_space<vmem>>) attributes {dimension_semantics = [#tpu.dimension_semantics<parallel>, #tpu.dimension_semantics<parallel>], iteration_bounds = array<i64: 2, 1>, scalar_prefetch = 0 : i64, scratch_operands = 0 : i64, tpu.core_type = #tpu.core_type<tc>, window_params = [{transform_indices = @transform_0, window_bounds = array<i64: 1, 128, 128>}, {pipeline_mode = #tpu.pipeline_mode<synchronous>, transform_indices = @transform_1, window_bounds = array<i64: 128, 384>}, {pipeline_mode = #tpu.pipeline_mode<synchronous>, transform_indices = @transform_2, window_bounds = array<i64: 1, 384>}, {transform_indices = @transform_3, window_bounds = array<i64: 1, 128, 384>}]} {
    %c0 = arith.constant 0 : index
    %c0_0 = arith.constant 0 : index
    %c0_1 = arith.constant 0 : index
    %0 = vector.load %arg2[%c0, %c0_0, %c0_1] : memref<1x128x128xbf16, #tpu.memory_space<vmem>>, vector<1x128x128xbf16>
    %1 = vector.shape_cast %0 : vector<1x128x128xbf16> to vector<128x128xbf16>
    %c0_2 = arith.constant 0 : index
    %c0_3 = arith.constant 0 : index
    %2 = vector.load %arg3[%c0_2, %c0_3] : memref<128x384xbf16, #tpu.memory_space<vmem>>, vector<128x384xbf16>
    %cst = arith.constant dense<0.000000e+00> : vector<128x384xf32>
    %3 = tpu.matmul %1, %2, %cst {dimension_numbers = #tpu.dot_dimension_numbers<[1], [0], [0], [1], [0, 0, 1, 1], [], []>} : vector<128x128xbf16>, vector<128x384xbf16>, vector<128x384xf32> -> vector<128x384xf32>
    %c0_4 = arith.constant 0 : index
    %c0_5 = arith.constant 0 : index
    %4 = vector.load %arg4[%c0_4, %c0_5] : memref<1x384xf32, #tpu.memory_space<vmem>>, vector<1x384xf32>
    %5 = vector.broadcast %4 : vector<1x384xf32> to vector<128x384xf32>
    %6 = arith.addf %3, %5 : vector<128x384xf32>
    %7 = arith.truncf %6 : vector<128x384xf32> to vector<128x384xbf16>
    %c0_6 = arith.constant 0 : index
    %c0_7 = arith.constant 0 : index
    %c0_8 = arith.constant 0 : index
    %8 = vector.load %arg5[%c0_6, %c0_7, %c0_8] : memref<1x128x384xbf16, #tpu.memory_space<vmem>>, vector<1x128x384xbf16>
    %9 = vector.shape_cast %8 : vector<1x128x384xbf16> to vector<128x384xbf16>
    %10 = vector.shape_cast %7 : vector<128x384xbf16> to vector<1x128x384xbf16>
    tpu.vector_store %arg5[%c0_6, %c0_7, %c0_8], %10 {strides = array<i32>} : memref<1x128x384xbf16, #tpu.memory_space<vmem>>, vector<1x128x384xbf16>,
    return
  }
  func.func @transform_0(%arg0: i32, %arg1: i32) -> (i32, i32, i32) {
    %c0_i32 = arith.constant 0 : i32
    %c0_i32_0 = arith.constant 0 : i32
    return %arg0, %arg1, %c0_i32 : i32, i32, i32
  }
  func.func @transform_1(%arg0: i32, %arg1: i32) -> (i32, i32) {
    %c0_i32 = arith.constant 0 : i32
    %c0_i32_0 = arith.constant 0 : i32
    %c0_i32_1 = arith.constant 0 : i32
    return %c0_i32, %c0_i32_0 : i32, i32
  }
  func.func @transform_2(%arg0: i32, %arg1: i32) -> (i32, i32) {
    %c0_i32 = arith.constant 0 : i32
    %c0_i32_0 = arith.constant 0 : i32
    %c0_i32_1 = arith.constant 0 : i32
    return %c0_i32, %c0_i32_0 : i32, i32
  }
  func.func @transform_3(%arg0: i32, %arg1: i32) -> (i32, i32, i32) {
    %c0_i32 = arith.constant 0 : i32
    %c0_i32_0 = arith.constant 0 : i32
    return %arg0, %arg1, %c0_i32 : i32, i32, i32
  }
}

module attributes {stable_mosaic.version = 11 : i64} {
  func.func @_attn_epilogue_kernel(%arg0: i32, %arg1: i32, %arg2: i32, %arg3: memref<1x128x128xbf16, #tpu.memory_space<vmem>>, %arg4: memref<1x32x128xbf16, #tpu.memory_space<vmem>>, %arg5: memref<1x32x128xbf16, #tpu.memory_space<vmem>>, %arg6: memref<1x128x128xf32, #tpu.memory_space<vmem>>, %arg7: memref<128x128xbf16, #tpu.memory_space<vmem>>, %arg8: memref<1x128xf32, #tpu.memory_space<vmem>>, %arg9: memref<1x128x128xf32, #tpu.memory_space<vmem>>, %arg10: memref<128x128xf32, #tpu.memory_space<vmem>>) attributes {dimension_semantics = [#tpu.dimension_semantics<parallel>, #tpu.dimension_semantics<parallel>, #tpu.dimension_semantics<arbitrary>], iteration_bounds = array<i64: 2, 1, 1>, scalar_prefetch = 0 : i64, scratch_operands = 1 : i64, tpu.core_type = #tpu.core_type<tc>, window_params = [{transform_indices = @transform_0, window_bounds = array<i64: 1, 128, 128>}, {transform_indices = @transform_1, window_bounds = array<i64: 1, 32, 128>}, {transform_indices = @transform_2, window_bounds = array<i64: 1, 32, 128>}, {transform_indices = @transform_3, window_bounds = array<i64: 1, 128, 128>}, {pipeline_mode = #tpu.pipeline_mode<synchronous>, transform_indices = @transform_4, window_bounds = array<i64: 128, 128>}, {pipeline_mode = #tpu.pipeline_mode<synchronous>, transform_indices = @transform_5, window_bounds = array<i64: 1, 128>}, {transform_indices = @transform_6, window_bounds = array<i64: 1, 128, 128>}]} {
    %c0_i32 = arith.constant 0 : i32
    %0 = arith.cmpi eq, %arg2, %c0_i32 : i32
    %1 = arith.extui %0 : i1 to i32
    %c0_i32_0 = arith.constant 0 : i32
    %2 = arith.cmpi ne, %1, %c0_i32_0 : i32
    scf.if %2 {
      %cst_16 = arith.constant 0.000000e+00 : f32
      %18 = vector.broadcast %cst_16 : f32 to vector<128x128xf32>
      %c0_17 = arith.constant 0 : index
      %c0_18 = arith.constant 0 : index
      %19 = vector.load %arg10[%c0_17, %c0_18] : memref<128x128xf32, #tpu.memory_space<vmem>>, vector<128x128xf32>
      tpu.vector_store %arg10[%c0_17, %c0_18], %18 {strides = array<i32>} : memref<128x128xf32, #tpu.memory_space<vmem>>, vector<128x128xf32>,
    } else {
    }
    %c0 = arith.constant 0 : index
    %c0_1 = arith.constant 0 : index
    %c0_2 = arith.constant 0 : index
    %3 = vector.load %arg3[%c0, %c0_1, %c0_2] : memref<1x128x128xbf16, #tpu.memory_space<vmem>>, vector<1x128x128xbf16>
    %4 = vector.shape_cast %3 : vector<1x128x128xbf16> to vector<128x128xbf16>
    %c0_3 = arith.constant 0 : index
    %c0_4 = arith.constant 0 : index
    %c0_5 = arith.constant 0 : index
    %5 = vector.load %arg4[%c0_3, %c0_4, %c0_5] : memref<1x32x128xbf16, #tpu.memory_space<vmem>>, vector<1x32x128xbf16>
    %6 = vector.shape_cast %5 : vector<1x32x128xbf16> to vector<32x128xbf16>
    %cst = arith.constant dense<0.000000e+00> : vector<128x32xf32>
    %7 = tpu.matmul %4, %6, %cst {dimension_numbers = #tpu.dot_dimension_numbers<[1], [1], [0], [0], [0, 0, 1, 0], [], []>} : vector<128x128xbf16>, vector<32x128xbf16>, vector<128x32xf32> -> vector<128x32xf32>
    %c0_6 = arith.constant 0 : index
    %c0_7 = arith.constant 0 : index
    %8 = vector.load %arg10[%c0_6, %c0_7] : memref<128x128xf32, #tpu.memory_space<vmem>>, vector<128x128xf32>
    %9 = arith.truncf %7 : vector<128x32xf32> to vector<128x32xbf16>
    %c0_8 = arith.constant 0 : index
    %c0_9 = arith.constant 0 : index
    %c0_10 = arith.constant 0 : index
    %10 = vector.load %arg5[%c0_8, %c0_9, %c0_10] : memref<1x32x128xbf16, #tpu.memory_space<vmem>>, vector<1x32x128xbf16>
    %11 = vector.shape_cast %10 : vector<1x32x128xbf16> to vector<32x128xbf16>
    %cst_11 = arith.constant dense<0.000000e+00> : vector<128x128xf32>
    %12 = tpu.matmul %9, %11, %cst_11 {dimension_numbers = #tpu.dot_dimension_numbers<[1], [0], [0], [1], [0, 0, 1, 1], [], []>} : vector<128x32xbf16>, vector<32x128xbf16>, vector<128x128xf32> -> vector<128x128xf32>
    %13 = arith.addf %8, %12 : vector<128x128xf32>
    %c0_12 = arith.constant 0 : index
    %c0_13 = arith.constant 0 : index
    %14 = vector.load %arg10[%c0_12, %c0_13] : memref<128x128xf32, #tpu.memory_space<vmem>>, vector<128x128xf32>
    tpu.vector_store %arg10[%c0_12, %c0_13], %13 {strides = array<i32>} : memref<128x128xf32, #tpu.memory_space<vmem>>, vector<128x128xf32>,
    %c0_i32_14 = arith.constant 0 : i32
    %15 = arith.cmpi eq, %arg2, %c0_i32_14 : i32
    %16 = arith.extui %15 : i1 to i32
    %c0_i32_15 = arith.constant 0 : i32
    %17 = arith.cmpi ne, %16, %c0_i32_15 : i32
    scf.if %17 {
      %c0_16 = arith.constant 0 : index
      %c0_17 = arith.constant 0 : index
      %18 = vector.load %arg10[%c0_16, %c0_17] : memref<128x128xf32, #tpu.memory_space<vmem>>, vector<128x128xf32>
      %19 = arith.truncf %18 : vector<128x128xf32> to vector<128x128xbf16>
      %c0_18 = arith.constant 0 : index
      %c0_19 = arith.constant 0 : index
      %20 = vector.load %arg7[%c0_18, %c0_19] : memref<128x128xbf16, #tpu.memory_space<vmem>>, vector<128x128xbf16>
      %cst_20 = arith.constant dense<0.000000e+00> : vector<128x128xf32>
      %21 = tpu.matmul %19, %20, %cst_20 {dimension_numbers = #tpu.dot_dimension_numbers<[1], [0], [0], [1], [0, 0, 1, 1], [], []>} : vector<128x128xbf16>, vector<128x128xbf16>, vector<128x128xf32> -> vector<128x128xf32>
      %c0_21 = arith.constant 0 : index
      %c0_22 = arith.constant 0 : index
      %22 = vector.load %arg8[%c0_21, %c0_22] : memref<1x128xf32, #tpu.memory_space<vmem>>, vector<1x128xf32>
      %23 = vector.broadcast %22 : vector<1x128xf32> to vector<128x128xf32>
      %24 = arith.addf %21, %23 : vector<128x128xf32>
      %c0_23 = arith.constant 0 : index
      %c0_24 = arith.constant 0 : index
      %c0_25 = arith.constant 0 : index
      %25 = vector.load %arg6[%c0_23, %c0_24, %c0_25] : memref<1x128x128xf32, #tpu.memory_space<vmem>>, vector<1x128x128xf32>
      %26 = vector.shape_cast %25 : vector<1x128x128xf32> to vector<128x128xf32>
      %27 = arith.addf %24, %26 : vector<128x128xf32>
      %c0_26 = arith.constant 0 : index
      %c0_27 = arith.constant 0 : index
      %c0_28 = arith.constant 0 : index
      %28 = vector.load %arg9[%c0_26, %c0_27, %c0_28] : memref<1x128x128xf32, #tpu.memory_space<vmem>>, vector<1x128x128xf32>
      %29 = vector.shape_cast %28 : vector<1x128x128xf32> to vector<128x128xf32>
      %30 = vector.shape_cast %27 : vector<128x128xf32> to vector<1x128x128xf32>
      tpu.vector_store %arg9[%c0_26, %c0_27, %c0_28], %30 {strides = array<i32>} : memref<1x128x128xf32, #tpu.memory_space<vmem>>, vector<1x128x128xf32>,
    } else {
    }
    return
  }
  func.func @transform_0(%arg0: i32, %arg1: i32, %arg2: i32) -> (i32, i32, i32) {
    %c0_i32 = arith.constant 0 : i32
    %c0_i32_0 = arith.constant 0 : i32
    return %arg0, %arg1, %c0_i32 : i32, i32, i32
  }
  func.func @transform_1(%arg0: i32, %arg1: i32, %arg2: i32) -> (i32, i32, i32) {
    %c0_i32 = arith.constant 0 : i32
    %c0_i32_0 = arith.constant 0 : i32
    return %arg0, %arg2, %c0_i32 : i32, i32, i32
  }
  func.func @transform_2(%arg0: i32, %arg1: i32, %arg2: i32) -> (i32, i32, i32) {
    %c0_i32 = arith.constant 0 : i32
    %c0_i32_0 = arith.constant 0 : i32
    return %arg0, %arg2, %c0_i32 : i32, i32, i32
  }
  func.func @transform_3(%arg0: i32, %arg1: i32, %arg2: i32) -> (i32, i32, i32) {
    %c0_i32 = arith.constant 0 : i32
    %c0_i32_0 = arith.constant 0 : i32
    return %arg0, %arg1, %c0_i32 : i32, i32, i32
  }
  func.func @transform_4(%arg0: i32, %arg1: i32, %arg2: i32) -> (i32, i32) {
    %c0_i32 = arith.constant 0 : i32
    %c0_i32_0 = arith.constant 0 : i32
    %c0_i32_1 = arith.constant 0 : i32
    return %c0_i32, %c0_i32_0 : i32, i32
  }
  func.func @transform_5(%arg0: i32, %arg1: i32, %arg2: i32) -> (i32, i32) {
    %c0_i32 = arith.constant 0 : i32
    %c0_i32_0 = arith.constant 0 : i32
    %c0_i32_1 = arith.constant 0 : i32
    return %c0_i32, %c0_i32_0 : i32, i32
  }
  func.func @transform_6(%arg0: i32, %arg1: i32, %arg2: i32) -> (i32, i32, i32) {
    %c0_i32 = arith.constant 0 : i32
    %c0_i32_0 = arith.constant 0 : i32
    return %arg0, %arg1, %c0_i32 : i32, i32, i32
  }
}

</mosaic_0001>

<bundles_post_ra>
// kernel: _lambda_.4
= control target key start
LH: loop header
LB: loop body
LE: loop exit
PB: predicated region body
PF: predicated region fallthrough
CT: control target
= control target key end

     0   :  { %s1215_s12 = smov 0   ;;  %s1217_s13 = smov 0   ;;  %s1433_s0 = inlined_call_operand.vmem [shape: bf16[2,128,128], index: 0, kind: input, shape index: {}]   ;;  %s1434_s1 = inlined_call_operand.vmem [shape: bf16[128,384], index: 1, kind: input, shape index: {}]   ;;  %s1435_s2 = inlined_call_operand.vmem [shape: f32[1,384], index: 2, kind: input, shape index: {}]   ;;  %s1436_s3 = inlined_call_operand.vmem [shape: bf16[2,128,384], index: 3, kind: output, shape index: {}]  }
   0x1   :  { %s1219_s14 = smov 0  }
   0x2 LB: > { %s25_s15 = sadd.s32 1, %s1188_s13  ;;  %p953_p0 = scmp.ge.s32.totalorder %s1192_s14, 1  ;;  %s1192_s14 = sphi %s1219_s14, %s13_s14   ;;  %s1188_s13 = sphi %s1217_s13, %s1438_s13   ;;  %s1184_s12 = sphi %s1215_s12, %s1437_s12  }
   0x3   : > { %p27_p1 = scmp.ge.s32.totalorder %s25_s15, 2  ;;  %p158_p2 = scmp.lt.s32.totalorder %s1192_s14, 3 }
   0x5   : > { %s1440_s15 = smov (%p27_p1, %s25_s15), 0  ;;  %p159_p3 = pnand %p953_p0, %p158_p2 }
   0x6   : > { %v1130_v0 = vld [vmem:[%s1434_s1 + $0x4] ss:$12 sps:$4 sm:$0xff] (!%p159_p3)   ;;  %p192_p4 = scmp.lt.s32.totalorder (!%p159_p3), %s1184_s12, 1  ;;  %v1132_v1 = vld [vmem:[%s1434_s1] ss:$12 sps:$4 sm:$0xff] (!%p159_p3)   ;;  %v1194_v2 = vmov (!%p159_p3), 0   ;;  %v263_v33 = vlaneseq (!%p159_p3) }
   0x7   : > { %162 = sbr.rel (%p159_p3) target bundleno = 315 (0x13b), region = 32  ;;  %486 = vmatprep.mubr.bf16.mxu0 (!%p159_p3), %v1194_v2  ;;  %454 = vmatprep.subr.bf16.mxu0 (!%p159_p3), %v1130_v0  ;;  %v1133_v3 = vld [vmem:[%s1434_s1 + $0x1c] ss:$12 sps:$4 sm:$0xff] (!%p159_p3)   ;;  %v1135_v4 = vld [vmem:[%s1434_s1 + $0x18] ss:$12 sps:$4 sm:$0xff] (!%p159_p3)  }
   0x8   : > { %455 = vmatpush1.bf16.msra.mxu0 (!%p159_p3), %v1132_v1  ;;  %v1136_v5 = vld [vmem:[%s1434_s1 + $0x34] ss:$12 sps:$4 sm:$0xff] (!%p159_p3)   ;;  %v1138_v6 = vld [vmem:[%s1434_s1 + $0x30] ss:$12 sps:$4 sm:$0xff] (!%p159_p3)   ;;  %v1139_v7 = vld [vmem:[%s1434_s1 + $0x4c] ss:$12 sps:$4 sm:$0xff] (!%p159_p3)  }
   0x9   : > { %456 = vmatprep.subr.bf16.mxu0 (!%p159_p3), %v1133_v3  ;;  %v1141_v8 = vld [vmem:[%s1434_s1 + $0x48] ss:$12 sps:$4 sm:$0xff] (!%p159_p3)   ;;  %v1142_v9 = vld [vmem:[%s1434_s1 + $0x64] ss:$12 sps:$4 sm:$0xff] (!%p159_p3)   ;;  %v1156_v12 = vld [vmem:[%s1434_s1 + $0x20] ss:$12 sps:$4 sm:$0xff] (!%p159_p3)  }
   0xa   : > { %v1154_v10 = vld [vmem:[%s1434_s1 + $0x8] ss:$12 sps:$4 sm:$0xff] (!%p159_p3)   ;;  %v1144_v13 = vld [vmem:[%s1434_s1 + $0x60] ss:$12 sps:$4 sm:$0xff] (!%p159_p3)   ;;  %v1157_v14 = vld [vmem:[%s1434_s1 + $0x38] ss:$12 sps:$4 sm:$0xff] (!%p159_p3)  }
   0xb   : > { %1072 = vmatprep.subr.bf16.mxu1 (!%p159_p3), %v1154_v10  ;;  %v1145_v15 = vld [vmem:[%s1434_s1 + $0x7c] ss:$12 sps:$4 sm:$0xff] (!%p159_p3)   ;;  %v1147_v16 = vld [vmem:[%s1434_s1 + $0x78] ss:$12 sps:$4 sm:$0xff] (!%p159_p3)   ;;  %v1148_v18 = vld [vmem:[%s1434_s1 + $0x94] ss:$12 sps:$4 sm:$0xff] (!%p159_p3)  }
   0xc   : > { %457 = vmatpush1.bf16.msra.mxu0 (!%p159_p3), %v1135_v4  ;;  %1073 = vmatpush3.bf16.msra.mxu1 (!%p159_p3), %v1154_v10  ;;  %v1159_v17 = vld [vmem:[%s1434_s1 + $0x50] ss:$12 sps:$4 sm:$0xff] (!%p159_p3)   ;;  %v1160_v20 = vld [vmem:[%s1434_s1 + $0x68] ss:$12 sps:$4 sm:$0xff] (!%p159_p3)   ;;  %v1151_v21 = vld [vmem:[%s1434_s1 + $0xac] ss:$12 sps:$4 sm:$0xff] (!%p159_p3)  }
   0xd   : > { %458 = vmatprep.subr.bf16.mxu0 (!%p159_p3), %v1136_v5  ;;  %1074 = vmatprep.subr.bf16.mxu1 (!%p159_p3), %v1156_v12  ;;  %v1150_v19 = vld [vmem:[%s1434_s1 + $0x90] ss:$12 sps:$4 sm:$0xff] (!%p159_p3)   ;;  %v1153_v22 = vld [vmem:[%s1434_s1 + $0xa8] ss:$12 sps:$4 sm:$0xff] (!%p159_p3)   ;;  %v1162_v23 = vld [vmem:[%s1434_s1 + $0x80] ss:$12 sps:$4 sm:$0xff] (!%p159_p3)  }
   0xe   : > { %s1442_s12 = smov (!%p192_p4, %s1184_s12), 1  ;;  %v1163_v24 = vld [vmem:[%s1434_s1 + $0x98] ss:$12 sps:$4 sm:$0xff]   ;;  %v1165_v25 = vld [vmem:[%s1434_s1 + $0xb0] ss:$12 sps:$4 sm:$0xff]   ;;  %v264_v34 = vshrl.u32 %v263_v33, 7 }
   0xf   : > { %s1023_s26 = sshll.u32 %s1442_s12, 6  ;;  %v261_v36 = vld [vmem:[%s1435_s2] sm:$0x7] }
  0x10   : > { %s1261_s6 = scalar_lea.vmem %s1433_s0, %s1023_s26  ;;  %459 = vmatpush1.bf16.msra.mxu0 %v1138_v6  ;;  %1075 = vmatpush3.bf16.msra.mxu1 %v1156_v12  ;;  %v265_v35 = vsub.s32 0, %v264_v34  ;;  %v269_v37 = vsub.s32 1, %v264_v34  ;;  %v273_v49 = vsub.s32 2, %v264_v34 }
  0x11   : > { %460 = vmatprep.subr.bf16.mxu0 %v1139_v7  ;;  %v1155_v11 = vld [vmem:[%s1261_s6] sm:$0xff]   ;;  %1076 = vmatprep.subr.bf16.mxu1 %v1157_v14  ;;  %v1158_v26 = vld [vmem:[%s1261_s6 + $0x8] sm:$0xff]   ;;  %v1161_v27 = vld [vmem:[%s1261_s6 + $0x10] sm:$0xff]  }
  0x12   : > { %1088 = vmatprep.mubr.bf16.mxu1 %v1155_v11  ;;  %v1164_v28 = vld [vmem:[%s1261_s6 + $0x18] sm:$0xff]   ;;  %v1166_v29 = vld [vmem:[%s1261_s6 + $0x20] sm:$0xff]   ;;  %v1167_v30 = vld [vmem:[%s1261_s6 + $0x28] sm:$0xff]   ;;  %v1332_v38 = vrot.slane %v261_v36, %v265_v35  ;;  %v1334_v39 = vrot.slane %v261_v36, %v269_v37  ;;  %v1348_v52 = vrot.slane %v261_v36, %v273_v49 }
  0x13   : > { %v1168_v31 = vld [vmem:[%s1261_s6 + $0x30] sm:$0xff]   ;;  %v1169_v32 = vld [vmem:[%s1261_s6 + $0x38] sm:$0xff]   ;;  %s1104_s6 = smul.u32 192, %s1442_s12 }
  0x14   : > { %461 = vmatpush1.bf16.msra.mxu0 %v1141_v8  ;;  %1077 = vmatpush3.bf16.msra.mxu1 %v1157_v14 }
  0x15   : > { %462 = vmatprep.subr.bf16.mxu0 %v1142_v9  ;;  %1078 = vmatprep.subr.bf16.mxu1 %v1159_v17  ;;  %s1342_s27 = scalar_lea.vmem %s1436_s3, %s1104_s6 }
  0x18   : > { %463 = vmatpush1.bf16.msra.mxu0 %v1144_v13  ;;  %1079 = vmatpush3.bf16.msra.mxu1 %v1159_v17 }
  0x19   : > { %464 = vmatprep.subr.bf16.mxu0 %v1145_v15  ;;  %1080 = vmatprep.subr.bf16.mxu1 %v1160_v20 }
  0x1c   : > { %465 = vmatpush1.bf16.msra.mxu0 %v1147_v16  ;;  %1081 = vmatpush3.bf16.msra.mxu1 %v1160_v20 }
  0x1d   : > { %466 = vmatprep.subr.bf16.mxu0 %v1148_v18  ;;  %1082 = vmatprep.subr.bf16.mxu1 %v1162_v23 }
  0x20   : > { %467 = vmatpush1.bf16.msra.mxu0 %v1150_v19  ;;  %1083 = vmatpush3.bf16.msra.mxu1 %v1162_v23 }
  0x21   : > { %468 = vmatprep.subr.bf16.mxu0 %v1151_v21  ;;  %1084 = vmatprep.subr.bf16.mxu1 %v1163_v24 }
  0x24   : > { %469 = vmatpush1.bf16.msra.mxu0 %v1153_v22  ;;  %1085 = vmatpush3.bf16.msra.mxu1 %v1163_v24 }
  0x25   : > { %1086 = vmatprep.subr.bf16.mxu1 %v1165_v25 }
  0x27   : > { %487 = vmatmul.mubr.bf16.vlgmr.msra.gmra.mrb[0].mxu0 %v1155_v11 }
  0x28   : > { %496 = vmatprep.mubr.bf16.mxu0 %v1194_v2  ;;  %1087 = vmatpush3.bf16.msra.mxu1 %v1165_v25 }
  0x2b   : > { %1089 = vmatmul.mubr.bf16.vlgmr.msra.gmra.mrb[0].mxu1 %v1158_v26 }
  0x2c   : > { %1092 = vmatprep.mubr.bf16.mxu1 %v1161_v27 }
  0x2f   : > { %497 = vmatmul.mubr.bf16.gmra.mrb[4].mxu0 %v1158_v26 }
  0x30   : > { %506 = vmatprep.mubr.bf16.mxu0 %v1194_v2 }
  0x33   : > { %1093 = vmatmul.mubr.bf16.gmra.mrb[4].mxu1 %v1164_v28 }
  0x34   : > { %1096 = vmatprep.mubr.bf16.mxu1 %v1166_v29 }
  0x37   : > { %507 = vmatmul.mubr.bf16.gmra.mrb[8].mxu0 %v1161_v27 }
  0x38   : > { %516 = vmatprep.mubr.bf16.mxu0 %v1194_v2 }
  0x3b   : > { %1097 = vmatmul.mubr.bf16.gmra.mrb[8].mxu1 %v1167_v30 }
  0x3c   : > { %1100 = vmatprep.mubr.bf16.mxu1 %v1168_v31 }
  0x3f   : > { %517 = vmatmul.mubr.bf16.gmra.mrb[12].mxu0 %v1164_v28 }
  0x40   : > { %526 = vmatprep.mubr.bf16.mxu0 %v1194_v2 }
  0x43   : > { %1101 = vmatmul.mubr.bf16.gmra.mrb[12].mxu1 %v1169_v32 }
  0x47   : > { %527 = vmatmul.mubr.bf16.gmra.mrb[16].mxu0 %v1166_v29 }
  0x48   : > { %536 = vmatprep.mubr.bf16.mxu0 %v1194_v2 }
  0x4f   : > { %537 = vmatmul.mubr.bf16.gmra.mrb[20].mxu0 %v1167_v30 }
  0x50   : > { %546 = vmatprep.mubr.bf16.mxu0 %v1194_v2 }
  0x57   : > { %547 = vmatmul.mubr.bf16.gmra.mrb[24].mxu0 %v1168_v31 }
  0x58   : > { %556 = vmatprep.mubr.bf16.mxu0 %v1194_v2 }
  0x5f   : > { %557 = vmatmul.mubr.bf16.gmra.mrb[28].mxu0 %v1169_v32 }
  0xfa   : > { %v488_v40 = vpop.f32.mrb[0].mxu0 }
  0xfb   : > { %v489_v41 = vadd.f32 %v488_v40, %v1332_v38  ;;  %v490_v42 = vpop.f32.mrb[1].mxu0 }
  0xfc   : > { %v491_v43 = vadd.f32 %v490_v42, %v1334_v39  ;;  %v492_v44 = vpop.f32.mrb[2].mxu0 }
  0xfd   : > { %v493_v45 = vadd.f32 %v492_v44, %v1332_v38  ;;  %v494_v46 = vpop.f32.mrb[3].mxu0 }
  0xfe   : > { %v1024_v47 = vpack.c.bf16 %v491_v43, %v489_v41  ;;  %v495_v48 = vadd.f32 %v494_v46, %v1334_v39  ;;  %v1090_v59 = vpop.f32.mrb[0].mxu1 }
  0xff   : > { %v610_v62 = vadd.f32 %v1090_v59, %v1348_v52  ;;  %v601_v63 = vpop.f32.mrb[1].mxu1 }
 0x100   : > { %824 = vst [vmem:[%s1342_s27] sm:$0xff] %v1024_v47  ;;  %v1026_v50 = vpack.c.bf16 %v495_v48, %v493_v45  ;;  %v602_v0 = vadd.f32 %v601_v63, %v1348_v52  ;;  %v1091_v1 = vpop.f32.mrb[2].mxu1 }
 0x101   : > { %v1029_v3 = vpack.c.bf16 %v610_v62, %v610_v62  ;;  %v613_v4 = vadd.f32 %v1091_v1, %v1348_v52  ;;  %v604_v5 = vpop.f32.mrb[3].mxu1 }
 0x102   : > { %826 = vst [vmem:[%s1342_s27 + $0xc] sm:$0xff] %v1026_v50  ;;  %v498_v51 = vpop.f32.mrb[4].mxu0  ;;  %v1025_v6 = vpack.c.bf16 %v602_v0, %v602_v0  ;;  %v605_v7 = vadd.f32 %v604_v5, %v1348_v52 }
 0x103   : > { %v499_v53 = vadd.f32 %v498_v51, %v1332_v38  ;;  %v500_v54 = vpop.f32.mrb[5].mxu0  ;;  %829 = vst [vmem:[%s1342_s27 + $0x20] sm:$0xf] %v1029_v3  ;;  %v1031_v9 = vpack.c.bf16 %v613_v4, %v613_v4 }
 0x104   : > { %v501_v55 = vadd.f32 %v500_v54, %v1334_v39  ;;  %v502_v56 = vpop.f32.mrb[6].mxu0  ;;  %825 = vst [vmem:[%s1342_s27 + $0x8] sm:$0xf] %v1025_v6  ;;  %v1027_v12 = vpack.c.bf16 %v605_v7, %v605_v7 }
 0x105   : > { %v503_v57 = vadd.f32 %v502_v56, %v1332_v38  ;;  %v504_v58 = vpop.f32.mrb[7].mxu0  ;;  %831 = vst [vmem:[%s1342_s27 + $0x2c] sm:$0xf] %v1031_v9 }
 0x106   : > { %v1028_v60 = vpack.c.bf16 %v501_v55, %v499_v53  ;;  %v505_v61 = vadd.f32 %v504_v58, %v1334_v39  ;;  %827 = vst [vmem:[%s1342_s27 + $0x14] sm:$0xf] %v1027_v12  ;;  %v1094_v17 = vpop.f32.mrb[4].mxu1 }
 0x107   : > { %v626_v20 = vadd.f32 %v1094_v17, %v1348_v52  ;;  %v617_v21 = vpop.f32.mrb[5].mxu1 }
 0x108   : > { %828 = vst [vmem:[%s1342_s27 + $0x18] sm:$0xff] %v1028_v60  ;;  %v1030_v2 = vpack.c.bf16 %v505_v61, %v503_v57  ;;  %v618_v22 = vadd.f32 %v617_v21, %v1348_v52  ;;  %v1095_v23 = vpop.f32.mrb[6].mxu1 }
 0x109   : > { %v1037_v25 = vpack.c.bf16 %v626_v20, %v626_v20  ;;  %v629_v26 = vadd.f32 %v1095_v23, %v1348_v52  ;;  %v620_v27 = vpop.f32.mrb[7].mxu1 }
 0x10a   : > { %830 = vst [vmem:[%s1342_s27 + $0x24] sm:$0xff] %v1030_v2  ;;  %v508_v8 = vpop.f32.mrb[8].mxu0  ;;  %v1033_v28 = vpack.c.bf16 %v618_v22, %v618_v22  ;;  %v621_v29 = vadd.f32 %v620_v27, %v1348_v52 }
 0x10b   : > { %v509_v10 = vadd.f32 %v508_v8, %v1332_v38  ;;  %v510_v11 = vpop.f32.mrb[9].mxu0  ;;  %837 = vst [vmem:[%s1342_s27 + $0x50] sm:$0xf] %v1037_v25  ;;  %v1039_v31 = vpack.c.bf16 %v629_v26, %v629_v26 }
 0x10c   : > { %v511_v13 = vadd.f32 %v510_v11, %v1334_v39  ;;  %v512_v14 = vpop.f32.mrb[10].mxu0  ;;  %833 = vst [vmem:[%s1342_s27 + $0x38] sm:$0xf] %v1033_v28  ;;  %v1035_v34 = vpack.c.bf16 %v621_v29, %v621_v29 }
 0x10d   : > { %v513_v15 = vadd.f32 %v512_v14, %v1332_v38  ;;  %v514_v16 = vpop.f32.mrb[11].mxu0  ;;  %839 = vst [vmem:[%s1342_s27 + $0x5c] sm:$0xf] %v1039_v31 }
 0x10e   : > { %v1032_v18 = vpack.c.bf16 %v511_v13, %v509_v10  ;;  %v515_v19 = vadd.f32 %v514_v16, %v1334_v39  ;;  %835 = vst [vmem:[%s1342_s27 + $0x44] sm:$0xf] %v1035_v34  ;;  %v1098_v41 = vpop.f32.mrb[8].mxu1 }
 0x10f   : > { %v642_v44 = vadd.f32 %v1098_v41, %v1348_v52  ;;  %v633_v45 = vpop.f32.mrb[9].mxu1 }
 0x110   : > { %832 = vst [vmem:[%s1342_s27 + $0x30] sm:$0xff] %v1032_v18  ;;  %v1034_v24 = vpack.c.bf16 %v515_v19, %v513_v15  ;;  %v634_v46 = vadd.f32 %v633_v45, %v1348_v52  ;;  %v1099_v47 = vpop.f32.mrb[10].mxu1 }
 0x111   : > { %v1045_v49 = vpack.c.bf16 %v642_v44, %v642_v44  ;;  %v645_v50 = vadd.f32 %v1099_v47, %v1348_v52  ;;  %v636_v51 = vpop.f32.mrb[11].mxu1 }
 0x112   : > { %834 = vst [vmem:[%s1342_s27 + $0x3c] sm:$0xff] %v1034_v24  ;;  %v518_v30 = vpop.f32.mrb[12].mxu0  ;;  %v1041_v53 = vpack.c.bf16 %v634_v46, %v634_v46  ;;  %v637_v54 = vadd.f32 %v636_v51, %v1348_v52 }
 0x113   : > { %v519_v32 = vadd.f32 %v518_v30, %v1332_v38  ;;  %v520_v33 = vpop.f32.mrb[13].mxu0  ;;  %845 = vst [vmem:[%s1342_s27 + $0x80] sm:$0xf] %v1045_v49  ;;  %v1047_v56 = vpack.c.bf16 %v645_v50, %v645_v50 }
 0x114   : > { %v521_v35 = vadd.f32 %v520_v33, %v1334_v39  ;;  %v522_v36 = vpop.f32.mrb[14].mxu0  ;;  %841 = vst [vmem:[%s1342_s27 + $0x68] sm:$0xf] %v1041_v53  ;;  %v1043_v59 = vpack.c.bf16 %v637_v54, %v637_v54 }
 0x115   : > { %v523_v37 = vadd.f32 %v522_v36, %v1332_v38  ;;  %v524_v40 = vpop.f32.mrb[15].mxu0  ;;  %847 = vst [vmem:[%s1342_s27 + $0x8c] sm:$0xf] %v1047_v56 }
 0x116   : > { %v1036_v42 = vpack.c.bf16 %v521_v35, %v519_v32  ;;  %v525_v43 = vadd.f32 %v524_v40, %v1334_v39  ;;  %843 = vst [vmem:[%s1342_s27 + $0x74] sm:$0xf] %v1043_v59  ;;  %v1102_v0 = vpop.f32.mrb[12].mxu1 }
 0x117   : > { %v658_v3 = vadd.f32 %v1102_v0, %v1348_v52  ;;  %v649_v4 = vpop.f32.mrb[13].mxu1 }
 0x118   : > { %836 = vst [vmem:[%s1342_s27 + $0x48] sm:$0xff] %v1036_v42  ;;  %v1038_v48 = vpack.c.bf16 %v525_v43, %v523_v37  ;;  %v650_v5 = vadd.f32 %v649_v4, %v1348_v52  ;;  %v1103_v6 = vpop.f32.mrb[14].mxu1 }
 0x119   : > { %v1053_v8 = vpack.c.bf16 %v658_v3, %v658_v3  ;;  %v661_v9 = vadd.f32 %v1103_v6, %v1348_v52  ;;  %v652_v10 = vpop.f32.mrb[15].mxu1 }
 0x11a   : > { %838 = vst [vmem:[%s1342_s27 + $0x54] sm:$0xff] %v1038_v48  ;;  %v528_v55 = vpop.f32.mrb[16].mxu0  ;;  %v1049_v11 = vpack.c.bf16 %v650_v5, %v650_v5  ;;  %v653_v12 = vadd.f32 %v652_v10, %v1348_v52 }
 0x11b   : > { %v529_v57 = vadd.f32 %v528_v55, %v1332_v38  ;;  %v530_v58 = vpop.f32.mrb[17].mxu0  ;;  %853 = vst [vmem:[%s1342_s27 + $0xb0] sm:$0xf] %v1053_v8  ;;  %v1055_v14 = vpack.c.bf16 %v661_v9, %v661_v9 }
 0x11c   : > { %v531_v60 = vadd.f32 %v530_v58, %v1334_v39  ;;  %v532_v61 = vpop.f32.mrb[18].mxu0  ;;  %849 = vst [vmem:[%s1342_s27 + $0x98] sm:$0xf] %v1049_v11  ;;  %v1051_v17 = vpack.c.bf16 %v653_v12, %v653_v12 }
 0x11d   : > { %v533_v62 = vadd.f32 %v532_v61, %v1332_v38  ;;  %v534_v63 = vpop.f32.mrb[19].mxu0  ;;  %855 = vst [vmem:[%s1342_s27 + $0xbc] sm:$0xf] %v1055_v14 }
 0x11e   : > { %v1040_v1 = vpack.c.bf16 %v531_v60, %v529_v57  ;;  %v535_v2 = vadd.f32 %v534_v63, %v1334_v39  ;;  %851 = vst [vmem:[%s1342_s27 + $0xa4] sm:$0xf] %v1051_v17 }
 0x120   : > { %840 = vst [vmem:[%s1342_s27 + $0x60] sm:$0xff] %v1040_v1  ;;  %v1042_v7 = vpack.c.bf16 %v535_v2, %v533_v62 }
 0x122   : > { %842 = vst [vmem:[%s1342_s27 + $0x6c] sm:$0xff] %v1042_v7  ;;  %v538_v13 = vpop.f32.mrb[20].mxu0 }
 0x123   : > { %v539_v15 = vadd.f32 %v538_v13, %v1332_v38  ;;  %v540_v16 = vpop.f32.mrb[21].mxu0 }
 0x124   : > { %v541_v18 = vadd.f32 %v540_v16, %v1334_v39  ;;  %v542_v19 = vpop.f32.mrb[22].mxu0 }
 0x125   : > { %v543_v20 = vadd.f32 %v542_v19, %v1332_v38  ;;  %v544_v21 = vpop.f32.mrb[23].mxu0 }
 0x126   : > { %v1044_v52 = vpack.c.bf16 %v541_v18, %v539_v15  ;;  %v545_v22 = vadd.f32 %v544_v21, %v1334_v39 }
 0x128   : > { %844 = vst [vmem:[%s1342_s27 + $0x78] sm:$0xff] %v1044_v52  ;;  %v1046_v23 = vpack.c.bf16 %v545_v22, %v543_v20 }
 0x12a   : > { %846 = vst [vmem:[%s1342_s27 + $0x84] sm:$0xff] %v1046_v23  ;;  %v548_v24 = vpop.f32.mrb[24].mxu0 }
 0x12b   : > { %v549_v25 = vadd.f32 %v548_v24, %v1332_v38  ;;  %v550_v26 = vpop.f32.mrb[25].mxu0 }
 0x12c   : > { %v551_v27 = vadd.f32 %v550_v26, %v1334_v39  ;;  %v552_v28 = vpop.f32.mrb[26].mxu0 }
 0x12d   : > { %v553_v29 = vadd.f32 %v552_v28, %v1332_v38  ;;  %v554_v30 = vpop.f32.mrb[27].mxu0 }
 0x12e   : > { %v1048_v31 = vpack.c.bf16 %v551_v27, %v549_v25  ;;  %v555_v32 = vadd.f32 %v554_v30, %v1334_v39 }
 0x130   : > { %848 = vst [vmem:[%s1342_s27 + $0x90] sm:$0xff] %v1048_v31  ;;  %v1050_v33 = vpack.c.bf16 %v555_v32, %v553_v29 }
 0x132   : > { %850 = vst [vmem:[%s1342_s27 + $0x9c] sm:$0xff] %v1050_v33  ;;  %v558_v34 = vpop.f32.mrb[28].mxu0 }
 0x133   : > { %v559_v35 = vadd.f32 %v558_v34, %v1332_v38  ;;  %v560_v36 = vpop.f32.mrb[29].mxu0 }
 0x134   : > { %v561_v37 = vadd.f32 %v560_v36, %v1334_v39  ;;  %v562_v40 = vpop.f32.mrb[30].mxu0 }
 0x135   : > { %v563_v41 = vadd.f32 %v562_v40, %v1332_v38  ;;  %v564_v42 = vpop.f32.mrb[31].mxu0 }
 0x136   : > { %v1052_v43 = vpack.c.bf16 %v561_v37, %v559_v35  ;;  %v565_v44 = vadd.f32 %v564_v42, %v1334_v39 }
 0x138   : > { %852 = vst [vmem:[%s1342_s27 + $0xa8] sm:$0xff] %v1052_v43  ;;  %v1054_v45 = vpack.c.bf16 %v565_v44, %v563_v41 }
 0x13a   : > { %854 = vst [vmem:[%s1342_s27 + $0xb4] sm:$0xff] %v1054_v45 }
 0x13b PF: > { %s13_s14 = sadd.s32 1, %s1192_s14   ;;  %s1437_s12 = smov %s1188_s13 }
 0x13c   : > { %p10_p5 = scmp.ge.s32.totalorder %s13_s14, 4   ;;  %s1438_s13 = smov %s1440_s15 }
 0x13e   :  { %12 = sbr.rel (!%p10_p5) target bundleno = 2 (0x2), region = 62 }

// kernel: _lambda_.7
= control target key start
LH: loop header
LB: loop body
LE: loop exit
PB: predicated region body
PF: predicated region fallthrough
CT: control target
= control target key end

     0   :  { %s1463_s21 = smov 0   ;;  %s1465_s22 = smov 0   ;;  %s1599_s0 = inlined_call_operand.vmem [shape: bf16[2,128,128], index: 0, kind: input, shape index: {}]   ;;  %s1600_s1 = inlined_call_operand.vmem [shape: bf16[2,32,128], index: 1, kind: input, shape index: {}]   ;;  %s1601_s2 = inlined_call_operand.vmem [shape: bf16[2,32,128], index: 2, kind: input, shape index: {}]   ;;  %s1602_s3 = inlined_call_operand.vmem [shape: f32[2,128,128], index: 3, kind: input, shape index: {}]   ;;  %s1603_s4 = inlined_call_operand.vmem [shape: bf16[128,128], index: 4, kind: input, shape index: {}]   ;;  %s1604_s5 = inlined_call_operand.vmem [shape: f32[1,128], index: 5, kind: input, shape index: {}]   ;;  %s1605_s6 = inlined_call_operand.vmem [shape: f32[2,128,128], index: 6, kind: output, shape index: {}]  }
   0x1   :  { %s1467_s23 = smov 0  }
   0x2 LB: > { %s35_s24 = sadd.s32 1, %s1422_s22  ;;  %p1189_p0 = scmp.ge.s32.totalorder %s1426_s23, 1  ;;  %s1426_s23 = sphi %s1467_s23, %s16_s23   ;;  %s1422_s22 = sphi %s1465_s22, %s1607_s22   ;;  %s1418_s21 = sphi %s1463_s21, %s1606_s21  }
   0x3   : > { %p37_p1 = scmp.ge.s32.totalorder %s35_s24, 2  ;;  %p291_p2 = scmp.lt.s32.totalorder %s1426_s23, 3 }
   0x5   : > { %s1609_s24 = smov (%p37_p1, %s35_s24), 0  ;;  %p292_p3 = pnand %p1189_p0, %p291_p2 }
   0x6   : > { %p357_p4 = scmp.lt.s32.totalorder (!%p292_p3), %s1418_s21, 1  ;;  %v1396_v12 = vld [vmem:[%s1603_s4] sm:$0xff] (!%p292_p3)   ;;  %v1397_v13 = vld [vmem:[%s1603_s4 + $0x8] sm:$0xff] (!%p292_p3)   ;;  %v1398_v14 = vld [vmem:[%s1603_s4 + $0x10] sm:$0xff] (!%p292_p3)   ;;  %vm644_vm0 = vcmask (!%p292_p3), 261120  }
   0x7   : > { %295 = sbr.rel (%p292_p3) target bundleno = 714 (0x2ca), region = 44  ;;  %v1399_v15 = vld [vmem:[%s1603_s4 + $0x18] sm:$0xff] (!%p292_p3)   ;;  %v1400_v16 = vld [vmem:[%s1603_s4 + $0x20] sm:$0xff] (!%p292_p3)   ;;  %v1401_v17 = vld [vmem:[%s1603_s4 + $0x28] sm:$0xff] (!%p292_p3)  }
   0x8   : > { %v1402_v18 = vld [vmem:[%s1603_s4 + $0x30] sm:$0xff] (!%p292_p3)   ;;  %v1403_v43 = vld [vmem:[%s1603_s4 + $0x38] sm:$0xff] (!%p292_p3)  }
   0xe   : > { %s1611_s21 = smov (!%p357_p4, %s1418_s21), 1 }
   0xf   : > { %s1231_s25 = sshll.u32 %s1611_s21, 6  ;;  %s1232_s26 = sshll.u32 %s1611_s21, 4 }
  0x10   : > { %s364_s29 = scalar_lea.vmem %s1599_s0, %s1231_s25  ;;  %s374_s8 = scalar_lea.vmem %s1600_s1, %s1232_s26 }
  0x11   : > { %v1384_v0 = vld [vmem:[%s374_s8] sm:$0xff]   ;;  %v1385_v1 = vld [vmem:[%s374_s8 + $0x8] sm:$0xff]   ;;  %s384_s11 = scalar_lea.vmem %s1601_s2, %s1232_s26  ;;  %v1388_v5 = vld [vmem:[%s364_s29 + $0x10] sm:$0xff]   ;;  %s1234_s8 = sshll.u32 %s1611_s21, 7 }
  0x12   : > { %1272 = vmatprep.subr.bf16.mxu0 %v1384_v0  ;;  %v1386_v2 = vld [vmem:[%s364_s29] sm:$0xff]   ;;  %v1387_v4 = vld [vmem:[%s364_s29 + $0x8] sm:$0xff]   ;;  %v1389_v6 = vld [vmem:[%s364_s29 + $0x18] sm:$0xff]   ;;  %s1543_s15 = scalar_lea.vmem %s1605_s6, %s1234_s8 }
  0x13   : > { %1273 = vmatpush3.bf16.xpose.msra.mxu0 %v1384_v0  ;;  %1276 = vmatprep.mubr.bf16.mxu0 %v1386_v2  ;;  %v1394_v3 = vld [vmem:[%s384_s11] sm:$0xff]   ;;  %v1391_v8 = vld [vmem:[%s364_s29 + $0x28] sm:$0xff]   ;;  %v1392_v9 = vld [vmem:[%s364_s29 + $0x30] sm:$0xff]  }
  0x14   : > { %1274 = vmatprep.subr.bf16.mxu0 %v1385_v1  ;;  %1292 = vmatprep.subr.bf16.mxu1 %v1394_v3  ;;  %v1390_v7 = vld [vmem:[%s364_s29 + $0x20] sm:$0xff]   ;;  %v1393_v10 = vld [vmem:[%s364_s29 + $0x38] sm:$0xff]   ;;  %v1395_v11 = vld [vmem:[%s384_s11 + $0x8] sm:$0xff]   ;;  %s1530_s11 = scalar_lea.vmem %s1602_s3, %s1234_s8 }
  0x15   : > { %1293 = vmatpush3.bf16.msra.mxu1 %v1394_v3 }
  0x16   : > { %1294 = vmatprep.subr.bf16.mxu1 %v1395_v11 }
  0x19   : > { %1295 = vmatpush3.bf16.msra.mxu1 %v1395_v11 }
  0x1a   : > { %1344 = vmatprep.subr.bf16.mxu1 %v1396_v12 }
  0x1b   : > { %1275 = vmatpush3.bf16.xpose.msra.mxu0 %v1385_v1 }
  0x1c   : > { %1312 = vmatprep.subr.bf16.mxu0 %v1396_v12 }
  0x22   : > { %1277 = vmatmul.mubr.bf16.vlgmr.msra.gmra.mrb[0].mxu0 %v1387_v4  ;;  %v1535_v4 = vld [vmem:[%s1604_s5] ss:$0 sm:$0xff] }
  0x23   : > { %1280 = vmatprep.mubr.bf16.mxu0 %v1388_v5  ;;  %1313 = vmatpush3.bf16.msra.mxu0 %v1396_v12 }
  0x24   : > { %1314 = vmatprep.subr.bf16.mxu0 %v1397_v13 }
  0x27   : > { %1315 = vmatpush3.bf16.msra.mxu0 %v1397_v13 }
  0x28   : > { %1316 = vmatprep.subr.bf16.mxu0 %v1398_v14 }
  0x2a   : > { %1281 = vmatmul.mubr.bf16.gmra.mrb[4].mxu0 %v1389_v6  ;;  %v995_v6 = vld [vmem:[%s1530_s11 + $0x10] sm:$0xff] }
  0x2b   : > { %1284 = vmatprep.mubr.bf16.mxu0 %v1390_v7  ;;  %1317 = vmatpush3.bf16.msra.mxu0 %v1398_v14 }
  0x2c   : > { %1318 = vmatprep.subr.bf16.mxu0 %v1399_v15 }
  0x2f   : > { %1319 = vmatpush3.bf16.msra.mxu0 %v1399_v15 }
  0x30   : > { %1320 = vmatprep.subr.bf16.mxu0 %v1400_v16 }
  0x32   : > { %1285 = vmatmul.mubr.bf16.gmra.mrb[8].mxu0 %v1391_v8 }
  0x33   : > { %1288 = vmatprep.mubr.bf16.mxu0 %v1392_v9  ;;  %1321 = vmatpush3.bf16.msra.mxu0 %v1400_v16  ;;  %v993_v9 = vld [vmem:[%s1530_s11] sm:$0xff] }
  0x34   : > { %1322 = vmatprep.subr.bf16.mxu0 %v1401_v17 }
  0x37   : > { %1323 = vmatpush3.bf16.msra.mxu0 %v1401_v17 }
  0x38   : > { %1324 = vmatprep.subr.bf16.mxu0 %v1402_v18 }
  0x3a   : > { %1289 = vmatmul.mubr.bf16.gmra.mrb[12].mxu0 %v1393_v10 }
  0x3b   : > { %1325 = vmatpush3.bf16.msra.mxu0 %v1402_v18 }
  0x3c   : > { %1326 = vmatprep.subr.bf16.mxu0 %v1403_v43 }
  0x3f   : > { %1327 = vmatpush3.bf16.msra.mxu0 %v1403_v43 }
  0xf5   : > { %v1278_v19 = vpop.f32.mrb[0].mxu0 }
  0xf6   : > { %v541_v20 = vpop.f32.mrb[1].mxu0 }
  0xf7   : > { %v1279_v21 = vpop.f32.mrb[2].mxu0 }
  0xf8   : > { %v621_v22 = vpack.c.bf16 %v1279_v21, %v1278_v19  ;;  %v544_v23 = vpop.f32.mrb[3].mxu0 }
  0xf9   : > { %v620_v24 = vpack.c.bf16 %v544_v23, %v541_v20 }
  0xfb   : > { %1296 = vmatprep.mubr.msk.bf16.mxu1 %vm644_vm0, %v620_v24 }
  0xfc   : > { %1297 = vmatmul.mubr.msk.bf16.vlgmr.msra.gmra.mrb[0].mxu1 %vm644_vm0, %v621_v22  ;;  %v999_v22 = vld [vmem:[%s1530_s11 + $0x30] sm:$0xff] }
  0xfd   : > { %v1282_v25 = vpop.f32.mrb[4].mxu0  ;;  %1352 = vmatpush3.bf16.msra.mxu1 %v1396_v12  ;;  %v996_v12 = vld [vmem:[%s1530_s11 + $0x18] sm:$0xff] }
  0xfe   : > { %v557_v26 = vpop.f32.mrb[5].mxu0  ;;  %1345 = vmatprep.subr.bf16.mxu1 %v1397_v13 }
  0xff   : > { %v1283_v27 = vpop.f32.mrb[6].mxu0 }
 0x100   : > { %v623_v28 = vpack.c.bf16 %v1283_v27, %v1282_v25  ;;  %v560_v29 = vpop.f32.mrb[7].mxu0  ;;  %v997_v25 = vld [vmem:[%s1530_s11 + $0x20] sm:$0xff] }
 0x101   : > { %v622_v30 = vpack.c.bf16 %v560_v29, %v557_v26  ;;  %1353 = vmatpush3.bf16.msra.mxu1 %v1397_v13 }
 0x102   : > { %1346 = vmatprep.subr.bf16.mxu1 %v1398_v14 }
 0x103   : > { %1300 = vmatprep.mubr.msk.bf16.mxu1 %vm644_vm0, %v622_v30 }
 0x104   : > { %1301 = vmatmul.mubr.msk.bf16.gmra.mrb[4].mxu1 %vm644_vm0, %v623_v28  ;;  %v1000_v28 = vld [vmem:[%s1530_s11 + $0x38] sm:$0xff] }
 0x105   : > { %v1286_v31 = vpop.f32.mrb[8].mxu0  ;;  %1354 = vmatpush3.bf16.msra.mxu1 %v1398_v14 }
 0x106   : > { %v573_v32 = vpop.f32.mrb[9].mxu0  ;;  %1347 = vmatprep.subr.bf16.mxu1 %v1399_v15 }
 0x107   : > { %v1287_v33 = vpop.f32.mrb[10].mxu0 }
 0x108   : > { %v625_v34 = vpack.c.bf16 %v1287_v33, %v1286_v31  ;;  %v576_v35 = vpop.f32.mrb[11].mxu0 }
 0x109   : > { %v624_v36 = vpack.c.bf16 %v576_v35, %v573_v32  ;;  %1355 = vmatpush3.bf16.msra.mxu1 %v1399_v15  ;;  %v998_v32 = vld [vmem:[%s1530_s11 + $0x28] sm:$0xff] }
 0x10a   : > { %1348 = vmatprep.subr.bf16.mxu1 %v1400_v16 }
 0x10b   : > { %1304 = vmatprep.mubr.msk.bf16.mxu1 %vm644_vm0, %v624_v36 }
 0x10c   : > { %1305 = vmatmul.mubr.msk.bf16.gmra.mrb[8].mxu1 %vm644_vm0, %v625_v34 }
 0x10d   : > { %v1290_v37 = vpop.f32.mrb[12].mxu0  ;;  %1356 = vmatpush3.bf16.msra.mxu1 %v1400_v16  ;;  %v994_v16 = vld [vmem:[%s1530_s11 + $0x8] sm:$0xff] }
 0x10e   : > { %v589_v38 = vpop.f32.mrb[13].mxu0  ;;  %1349 = vmatprep.subr.bf16.mxu1 %v1401_v17 }
 0x10f   : > { %v1291_v39 = vpop.f32.mrb[14].mxu0 }
 0x110   : > { %v627_v40 = vpack.c.bf16 %v1291_v39, %v1290_v37  ;;  %v592_v41 = vpop.f32.mrb[15].mxu0 }
 0x111   : > { %v626_v42 = vpack.c.bf16 %v592_v41, %v589_v38  ;;  %1357 = vmatpush3.bf16.msra.mxu1 %v1401_v17  ;;  %v1003_v38 = vld [vmem:[%s1530_s11 + $0x50] sm:$0xff]  ;;  %v1001_v41 = vld [vmem:[%s1530_s11 + $0x40] sm:$0xff] }
 0x112   : > { %1350 = vmatprep.subr.bf16.mxu1 %v1402_v18 }
 0x113   : > { %1308 = vmatprep.mubr.msk.bf16.mxu1 %vm644_vm0, %v626_v42 }
 0x114   : > { %1309 = vmatmul.mubr.msk.bf16.gmra.mrb[12].mxu1 %vm644_vm0, %v627_v40 }
 0x115   : > { %1358 = vmatpush3.bf16.msra.mxu1 %v1402_v18 }
 0x116   : > { %1351 = vmatprep.subr.bf16.mxu1 %v1403_v43 }
 0x119   : > { %1359 = vmatpush3.bf16.msra.mxu1 %v1403_v43 }
 0x1cf   : > { %v1298_v44 = vpop.f32.mrb[0].mxu1 }
 0x1d0   : > { %v703_v45 = vpop.f32.mrb[1].mxu1 }
 0x1d1   : > { %v1299_v46 = vpop.f32.mrb[2].mxu1 }
 0x1d2   : > { %v818_v47 = vpack.c.bf16 %v1299_v46, %v1298_v44  ;;  %v706_v48 = vpop.f32.mrb[3].mxu1  ;;  %v1004_v44 = vld [vmem:[%s1530_s11 + $0x58] sm:$0xff] }
 0x1d3   : > { %v817_v49 = vpack.c.bf16 %v706_v48, %v703_v45  ;;  %v1002_v48 = vld [vmem:[%s1530_s11 + $0x48] sm:$0xff] }
 0x1d5   : > { %1328 = vmatprep.mubr.bf16.mxu0 %v817_v49 }
 0x1d6   : > { %1329 = vmatmul.mubr.bf16.vlgmr.msra.gmra.mrb[16].mxu0 %v818_v47 }
 0x1d7   : > { %v1302_v50 = vpop.f32.mrb[4].mxu1 }
 0x1d8   : > { %v719_v51 = vpop.f32.mrb[5].mxu1 }
 0x1d9   : > { %v1303_v52 = vpop.f32.mrb[6].mxu1 }
 0x1da   : > { %v820_v53 = vpack.c.bf16 %v1303_v52, %v1302_v50  ;;  %v722_v54 = vpop.f32.mrb[7].mxu1 }
 0x1db   : > { %v819_v55 = vpack.c.bf16 %v722_v54, %v719_v51  ;;  %v1007_v54 = vld [vmem:[%s1530_s11 + $0x70] sm:$0xff] }
 0x1dd   : > { %1332 = vmatprep.mubr.bf16.mxu1 %v819_v55 }
 0x1de   : > { %1333 = vmatmul.mubr.bf16.vlgmr.msra.gmra.mrb[16].mxu1 %v820_v53 }
 0x1df   : > { %v1306_v56 = vpop.f32.mrb[8].mxu1 }
 0x1e0   : > { %v735_v57 = vpop.f32.mrb[9].mxu1 }
 0x1e1   : > { %v1307_v58 = vpop.f32.mrb[10].mxu1 }
 0x1e2   : > { %v822_v59 = vpack.c.bf16 %v1307_v58, %v1306_v56  ;;  %v738_v60 = vpop.f32.mrb[11].mxu1 }
 0x1e3   : > { %v821_v61 = vpack.c.bf16 %v738_v60, %v735_v57  ;;  %v1005_v57 = vld [vmem:[%s1530_s11 + $0x60] sm:$0xff]  ;;  %v1008_v60 = vld [vmem:[%s1530_s11 + $0x78] sm:$0xff] }
 0x1e5   : > { %1336 = vmatprep.mubr.bf16.mxu1 %v821_v61 }
 0x1e6   : > { %1337 = vmatmul.mubr.bf16.gmra.mrb[20].mxu1 %v822_v59 }
 0x1e7   : > { %v1310_v62 = vpop.f32.mrb[12].mxu1 }
 0x1e8   : > { %v751_v63 = vpop.f32.mrb[13].mxu1 }
 0x1e9   : > { %v1311_v0 = vpop.f32.mrb[14].mxu1 }
 0x1ea   : > { %v824_v1 = vpack.c.bf16 %v1311_v0, %v1310_v62  ;;  %v754_v2 = vpop.f32.mrb[15].mxu1  ;;  %v1006_v0 = vld [vmem:[%s1530_s11 + $0x68] sm:$0xff] }
 0x1eb   : > { %v823_v3 = vpack.c.bf16 %v754_v2, %v751_v63 }
 0x1ed   : > { %1340 = vmatprep.mubr.bf16.mxu1 %v823_v3 }
 0x1ee   : > { %1341 = vmatmul.mubr.bf16.gmra.mrb[24].mxu1 %v824_v1 }
 0x2a9   : > { %v1330_v5 = vpop.f32.mrb[16].mxu0 }
 0x2aa   : > { %v939_v7 = vadd.f32 %v1330_v5, %v1535_v4  ;;  %v930_v8 = vpop.f32.mrb[17].mxu0 }
 0x2ab   : > { %v931_v10 = vadd.f32 %v1535_v4, %v930_v8  ;;  %v1331_v11 = vpop.f32.mrb[18].mxu0 }
 0x2ac   : > { %v1011_v13 = vadd.f32 %v995_v6, %v939_v7  ;;  %v942_v14 = vadd.f32 %v1331_v11, %v1535_v4  ;;  %v933_v15 = vpop.f32.mrb[19].mxu0 }
 0x2ad   : > { %v1009_v17 = vadd.f32 %v993_v9, %v931_v10  ;;  %v934_v18 = vadd.f32 %v1535_v4, %v933_v15 }
 0x2ae   : > { %1027 = vst [vmem:[%s1543_s15 + $0x10] sm:$0xff] %v1011_v13  ;;  %v1012_v19 = vadd.f32 %v996_v12, %v942_v14 }
 0x2af   : > { %1025 = vst [vmem:[%s1543_s15] sm:$0xff] %v1009_v17  ;;  %v1010_v20 = vadd.f32 %v994_v16, %v934_v18 }
 0x2b0   : > { %1028 = vst [vmem:[%s1543_s15 + $0x18] sm:$0xff] %v1012_v19 }
 0x2b1   : > { %1026 = vst [vmem:[%s1543_s15 + $0x8] sm:$0xff] %v1010_v20  ;;  %v1334_v21 = vpop.f32.mrb[16].mxu1 }
 0x2b2   : > { %v955_v23 = vadd.f32 %v1334_v21, %v1535_v4  ;;  %v946_v24 = vpop.f32.mrb[17].mxu1 }
 0x2b3   : > { %v947_v26 = vadd.f32 %v1535_v4, %v946_v24  ;;  %v1335_v27 = vpop.f32.mrb[18].mxu1 }
 0x2b4   : > { %v1015_v29 = vadd.f32 %v999_v22, %v955_v23  ;;  %v958_v30 = vadd.f32 %v1335_v27, %v1535_v4  ;;  %v949_v31 = vpop.f32.mrb[19].mxu1 }
 0x2b5   : > { %v1013_v33 = vadd.f32 %v997_v25, %v947_v26  ;;  %v950_v34 = vadd.f32 %v1535_v4, %v949_v31 }
 0x2b6   : > { %1031 = vst [vmem:[%s1543_s15 + $0x30] sm:$0xff] %v1015_v29  ;;  %v1016_v35 = vadd.f32 %v1000_v28, %v958_v30 }
 0x2b7   : > { %1029 = vst [vmem:[%s1543_s15 + $0x20] sm:$0xff] %v1013_v33  ;;  %v1014_v36 = vadd.f32 %v998_v32, %v950_v34 }
 0x2b8   : > { %1032 = vst [vmem:[%s1543_s15 + $0x38] sm:$0xff] %v1016_v35 }
 0x2b9   : > { %1030 = vst [vmem:[%s1543_s15 + $0x28] sm:$0xff] %v1014_v36  ;;  %v1338_v37 = vpop.f32.mrb[20].mxu1 }
 0x2ba   : > { %v971_v39 = vadd.f32 %v1338_v37, %v1535_v4  ;;  %v962_v40 = vpop.f32.mrb[21].mxu1 }
 0x2bb   : > { %v963_v42 = vadd.f32 %v1535_v4, %v962_v40  ;;  %v1339_v43 = vpop.f32.mrb[22].mxu1 }
 0x2bc   : > { %v1019_v45 = vadd.f32 %v1003_v38, %v971_v39  ;;  %v974_v46 = vadd.f32 %v1339_v43, %v1535_v4  ;;  %v965_v47 = vpop.f32.mrb[23].mxu1 }
 0x2bd   : > { %v1017_v49 = vadd.f32 %v1001_v41, %v963_v42  ;;  %v966_v50 = vadd.f32 %v1535_v4, %v965_v47 }
 0x2be   : > { %1035 = vst [vmem:[%s1543_s15 + $0x50] sm:$0xff] %v1019_v45  ;;  %v1020_v51 = vadd.f32 %v1004_v44, %v974_v46 }
 0x2bf   : > { %1033 = vst [vmem:[%s1543_s15 + $0x40] sm:$0xff] %v1017_v49  ;;  %v1018_v52 = vadd.f32 %v1002_v48, %v966_v50 }
 0x2c0   : > { %1036 = vst [vmem:[%s1543_s15 + $0x58] sm:$0xff] %v1020_v51 }
 0x2c1   : > { %1034 = vst [vmem:[%s1543_s15 + $0x48] sm:$0xff] %v1018_v52  ;;  %v1342_v53 = vpop.f32.mrb[24].mxu1 }
 0x2c2   : > { %v987_v55 = vadd.f32 %v1342_v53, %v1535_v4  ;;  %v978_v56 = vpop.f32.mrb[25].mxu1 }
 0x2c3   : > { %v979_v58 = vadd.f32 %v1535_v4, %v978_v56  ;;  %v1343_v59 = vpop.f32.mrb[26].mxu1 }
 0x2c4   : > { %v1023_v61 = vadd.f32 %v1007_v54, %v987_v55  ;;  %v990_v62 = vadd.f32 %v1343_v59, %v1535_v4  ;;  %v981_v63 = vpop.f32.mrb[27].mxu1 }
 0x2c5   : > { %v1021_v1 = vadd.f32 %v1005_v57, %v979_v58  ;;  %v982_v2 = vadd.f32 %v1535_v4, %v981_v63 }
 0x2c6   : > { %1039 = vst [vmem:[%s1543_s15 + $0x70] sm:$0xff] %v1023_v61  ;;  %v1024_v3 = vadd.f32 %v1008_v60, %v990_v62 }
 0x2c7   : > { %1037 = vst [vmem:[%s1543_s15 + $0x60] sm:$0xff] %v1021_v1  ;;  %v1022_v5 = vadd.f32 %v1006_v0, %v982_v2 }
 0x2c8   : > { %1040 = vst [vmem:[%s1543_s15 + $0x78] sm:$0xff] %v1024_v3 }
 0x2c9   : > { %1038 = vst [vmem:[%s1543_s15 + $0x68] sm:$0xff] %v1022_v5 }
 0x2ca PF: > { %s16_s23 = sadd.s32 1, %s1426_s23   ;;  %s1606_s21 = smov %s1422_s22 }
 0x2cb   : > { %p13_p5 = scmp.ge.s32.totalorder %s16_s23, 4   ;;  %s1607_s22 = smov %s1609_s24 }
 0x2cd   :  { %15 = sbr.rel (!%p13_p5) target bundleno = 2 (0x2), region = 91 }

</bundles_post_ra>
